<compile_context>
chip_gen: v6e
topology: v6e:2x2x1
jax: 0.10.0
libtpu: 0.0.40
codegen_flags: <defaults>
</compile_context>

<pallas_src>
import functools

import numpy as np

import jax
import jax.numpy as jnp
from jax.experimental import pallas as pl
from jax.experimental.pallas import tpu as pltpu


def _round_up(x, m):
    return ((x + m - 1) // m) * m


# ---------------------------------------------------------------------------
# Stage 1: GeM pooling + BatchNorm1d (eval, folded) + l2_norm
# ---------------------------------------------------------------------------
def _pool_bn_norm_kernel(x_ref,          # VMEM (1, C, HW)  backbone dtype (bf16/f32)
                         bn_scale_ref,   # VMEM (1, C)      gamma * rsqrt(var + eps)
                         bn_bias_ref,    # VMEM (1, C)      beta  - mean * scale
                         fea_ref,        # out VMEM (1, 1, C) f32
                         fn_ref,         # out VMEM (1, 1, C) bf16  l2_norm(fea)
                         *, gem_eps, p, int_p, l2_eps, inv_hw):
    # Upcast per-vreg inside the kernel: x streams from HBM in its native
    # (bf16) dtype, halving Stage-1 HBM traffic vs a wrapper-side f32 cast.
    x = x_ref[0].astype(jnp.float32)               # (C, HW)
    xc = jnp.maximum(x, gem_eps)

    if int_p is not None:
        # Integer GeM exponent: repeated VPU multiplies instead of an EUP
        # exp/log pair per element over C*HW.
        xp = xc
        for _ in range(int_p - 1):
            xp = xp * xc
        inv_p = 1.0 / float(int_p)
    else:
        xp = jnp.exp(jnp.log(xc) * p)
        inv_p = 1.0 / p

    # Mean over HW as (1, HW) @ (C, HW)^T on the MXU: the pooled row lands
    # lane-major (C on lanes) directly, so BN / l2_norm / the lane-dense
    # (1, 1, C) stores need no sublane->lane relayout.
    ones_row = jnp.full((1, xp.shape[-1]), inv_hw, dtype=jnp.float32)
    pooled = jax.lax.dot_general(ones_row, xp, (((1,), (1,)), ((), ())),
                                 preferred_element_type=jnp.float32)   # (1, C)

    fea = jnp.exp(jnp.log(pooled) * inv_p)          # pooled >= gem_eps**p > 0

    # BatchNorm1d (eval mode), folded to a single scale/bias at prep time.
    fea = fea * bn_scale_ref[...] + bn_bias_ref[...]
    fea_ref[0] = fea

    # l2_norm(fea, axis=1); tiny eps so an all-zero row cannot produce inf/NaN
    # (the reference divides by the raw norm -- only differs for ~zero rows).
    inv_norm = jax.lax.rsqrt(jnp.sum(fea * fea, axis=-1, keepdims=True) + l2_eps)
    fn_ref[0] = (fea * inv_norm).astype(fn_ref.dtype)


# ---------------------------------------------------------------------------
# Stage 2: BinaryHead, weight stream tiled over the (128-padded) class dim
# ---------------------------------------------------------------------------
def _binary_head_kernel(fn_ref,    # VMEM (B, C)   bf16, resident (same block every step)
                        w_ref,     # VMEM (C, TN)  bf16, streamed, already scaled by s
                        b_ref,     # VMEM (1, TN)  f32,  streamed, already scaled by s
                        out_ref):  # VMEM (B, TN)  f32
    out_ref[...] = jnp.dot(fn_ref[...], w_ref[...],
                           preferred_element_type=jnp.float32) + b_ref[...]


# ---------------------------------------------------------------------------
# One-time parameter preparation (do NOT redo per forward call)
# ---------------------------------------------------------------------------
def _default_weight_tile_bytes():
    """Per-generation weight tile for the class-streamed head.

    v5e (~0.82 TB/s HBM, 16 MiB scoped-VMEM default): 4 MiB tiles.
    v6e / v7x (1.4 / 3.2 TB/s): 8 MiB tiles to halve per-grid-step fixed cost;
    double-buffered 16 MiB still fits v7x's 32 MiB scoped / 64 MiB physical.
    """
    try:
        kind = jax.devices()[0].device_kind.lower()
    except Exception:
        kind = ""
    if ("v5 lite" in kind) or ("v5e" in kind) or ("v5lite" in kind):
        return 4 * 1024 * 1024
    return 8 * 1024 * 1024


def prepare_params(params, *, s=30.0, bn_eps=1e-5, weights_dtype=jnp.bfloat16,
                   max_tile_bytes=None):
    """Transpose/cast/pad the head weights, fold BN and the s scale, pick the
    class tile width.  Keep this off the per-call hot path (at real sizes the
    weight transpose + cast is a ~64-128 MiB operation)."""
    num_class, C = params["w_bin"].shape
    if max_tile_bytes is None:
        max_tile_bytes = _default_weight_tile_bytes()
    bytes_per_el = np.dtype(weights_dtype).itemsize

    # Pad classes only to the lane width (128), NOT to the tile width: the
    # class grid uses cdiv so the last tile is ragged instead of streaming
    # phantom-class weights (~5% dead weight DMA at tn=1024 / 15587 classes).
    n_pad = _round_up(num_class, 128)

    tn = max_tile_bytes // max(1, C * bytes_per_el)
    tn = max(128, min(2048, (tn // 128) * 128))
    tn = min(tn, n_pad)

    # BinaryHead: logit = (l2_norm(fea) @ W.T + b) * s.  Fold s into W and b so
    # the head kernel is a pure dot + bias (no per-tile scale multiply).
    # TODO(synk): optional int8 (v5e/v6e) or fp8-e4m3 (v7x) weight quantization
    # would halve the head's HBM stream again; needs accuracy validation.
    wbin_t = (params["w_bin"].astype(jnp.float32) * s).T.astype(weights_dtype)
    wbin_t = jnp.pad(wbin_t, ((0, 0), (0, n_pad - num_class)))
    bbin = jnp.pad(params["b_bin"].astype(jnp.float32) * s,
                   (0, n_pad - num_class)).reshape(1, n_pad)

    bn_scale = (params["bn_gamma"] *
                jax.lax.rsqrt(params["bn_var"] + bn_eps)).reshape(1, C)
    bn_bias = (params["bn_beta"] - params["bn_mean"] * bn_scale[0]).reshape(1, C)

    # GeM exponent p is a learned scalar whose concrete value is known at prep
    # time (eval); bake it as a compile-time constant and use an integer-power
    # VPU fast path when it is integral.
    p_val = float(np.asarray(jax.device_get(params["gem_p"])).reshape(-1)[0])
    p_round = round(p_val)
    int_p = int(p_round) if (abs(p_val - p_round) < 1e-6 and 1 <= p_round <= 8) else None

    # TODO(synk): MarginHead weights are intentionally not prepared; the
    # PyTorch eval forward computes logit_margin and then discards it.
    return {
        "p": p_val,
        "int_p": int_p,
        "bn_scale": bn_scale.astype(jnp.float32),
        "bn_bias": bn_bias.astype(jnp.float32),
        "w_bin_t": wbin_t,
        "b_bin": bbin,
        "num_class": num_class,
        "n_pad": n_pad,
        "tn": tn,
    }


# ---------------------------------------------------------------------------
# Forward wrapper (eval mode): returns (logit_binary, fea), matching PyTorch.
# ---------------------------------------------------------------------------
def whale_prev2nd_forward(x, prepped, *, gem_eps=1e-6, l2_eps=1e-12):
    B, C, H, W = x.shape
    assert C == prepped["bn_scale"].shape[1]
    HW = H * W

    # Free view (trailing-dim merge); no layout change, no dtype cast.
    xr = x.reshape(B, C, HW)

    # --- Stage 1: GeM + BN + l2_norm, grid over batch rows -----------------
    # TODO(synk): for very large feature maps (C*HW per row >> a few MiB) add
    # an HW grid axis with a (1, C) partial-sum accumulator + pl.when finalize.
    pool_kernel = functools.partial(
        _pool_bn_norm_kernel,
        gem_eps=float(gem_eps), l2_eps=float(l2_eps),
        p=prepped["p"], int_p=prepped["int_p"], inv_hw=1.0 / float(HW))

    fea3, fn3 = pl.pallas_call(
        pool_kernel,
        out_shape=(jax.ShapeDtypeStruct((B, 1, C), jnp.float32),    # fea
                   jax.ShapeDtypeStruct((B, 1, C), jnp.bfloat16)),  # l2_norm(fea)
        grid=(B,),
        in_specs=[pl.BlockSpec((1, C, HW), lambda b: (b, 0, 0)),
                  pl.BlockSpec((1, C), lambda b: (0, 0)),
                  pl.BlockSpec((1, C), lambda b: (0, 0))],
        out_specs=(pl.BlockSpec((1, 1, C), lambda b: (b, 0, 0)),
                   pl.BlockSpec((1, 1, C), lambda b: (b, 0, 0))),
        compiler_params=pltpu.CompilerParams(
            dimension_semantics=("parallel",),       # v7x: 2 TCs split batch
            vmem_limit_bytes=32 * 1024 * 1024),
    )(xr, prepped["bn_scale"], prepped["bn_bias"])

    fea = fea3.reshape(B, C)          # free reshape
    fn = fn3.reshape(B, C)            # free reshape (bf16, resident in Stage 2)

    # --- Stage 2: BinaryHead over class tiles (ragged last tile) -----------
    tn = prepped["tn"]
    n_pad = prepped["n_pad"]
    # TODO(synk): for very large batch, also tile B here.
    # TODO(synk): sweep pipeline_mode=pl.Buffered(3) on the weight spec if
    # traces show exposed DMA at tile boundaries (review item).
    logit_pad = pl.pallas_call(
        _binary_head_kernel,
        out_shape=jax.ShapeDtypeStruct((B, n_pad), jnp.float32),
        grid=(pl.cdiv(n_pad, tn),),
        in_specs=[pl.BlockSpec((B, C), lambda j: (0, 0)),     # fn: resident
                  pl.BlockSpec((C, tn), lambda j: (0, j)),    # streamed weights
                  pl.BlockSpec((1, tn), lambda j: (0, j))],   # streamed bias
        out_specs=pl.BlockSpec((B, tn), lambda j: (0, j)),
        compiler_params=pltpu.CompilerParams(
            dimension_semantics=("parallel",),       # v7x: 2 TCs split tiles
            vmem_limit_bytes=32 * 1024 * 1024),
    )(fn, prepped["w_bin_t"], prepped["b_bin"])

    logit_binary = logit_pad[:, :prepped["num_class"]]
    return logit_binary, fea


# ---------------------------------------------------------------------------
# Parameter init (mirrors the PyTorch module's eval-relevant parameters)
# ---------------------------------------------------------------------------
def init_params(key, in_features, num_class):
    ks = jax.random.split(key, 6)
    lim = 1.0 / jnp.sqrt(in_features)
    return {
        "gem_p":    jnp.ones((1,), jnp.float32) * 3.0,
        "bn_gamma": 1.0 + 0.1 * jax.random.normal(ks[0], (in_features,), jnp.float32),
        "bn_beta":  0.1 * jax.random.normal(ks[1], (in_features,), jnp.float32),
        "bn_mean":  0.1 * jax.random.normal(ks[2], (in_features,), jnp.float32),
        "bn_var":   1.0 + 0.1 * jax.random.uniform(ks[3], (in_features,), jnp.float32),
        "w_bin":    jax.random.uniform(ks[4], (num_class, in_features), jnp.float32,
                                       minval=-lim, maxval=lim),
        "b_bin":    jax.random.uniform(ks[5], (num_class,), jnp.float32,
                                       minval=-lim, maxval=lim),
        # w_margin intentionally not created: MarginHead output is discarded in
        # the eval-mode forward of the PyTorch module.
    }


if __name__ == "__main__":
    key = jax.random.PRNGKey(0)
    k_x, k_p = jax.random.split(key)

    B, C, H, W = 2, 32, 16, 16      # small "backbone feature map" shapes
    NUM_CLASS = 300                 # small stand-in for 15587 classes
    S = 30.0

    # Backbone output (post-conv feature map); positive-ish like post-ReLU,
    # fed in bf16 to exercise the in-kernel upcast path.
    x = jax.nn.softplus(
        jax.random.normal(k_x, (B, C, H, W), jnp.float32)).astype(jnp.bfloat16)
    params = init_params(k_p, C, NUM_CLASS)

    # Small max_tile_bytes so the class grid has >1 step and a ragged last
    # tile (at real sizes it is chosen per TPU generation automatically).
    prepped = prepare_params(params, s=S, max_tile_bytes=16 * 1024)

    logit_binary, fea = whale_prev2nd_forward(x, prepped)
    jax.block_until_ready((logit_binary, fea))

    assert logit_binary.shape == (B, NUM_CLASS)
    assert fea.shape == (B, C)

    # Pure-JAX reference (same bf16 rounding of fn / weights as the kernel).
    xf = x.astype(jnp.float32)
    xc = jnp.maximum(xf, 1e-6)
    pooled = jnp.mean(xc ** 3.0, axis=(2, 3))
    fea_ref = pooled ** (1.0 / 3.0)
    scale = params["bn_gamma"] * jax.lax.rsqrt(params["bn_var"] + 1e-5)
    fea_ref = fea_ref * scale + (params["bn_beta"] - params["bn_mean"] * scale)
    fn_ref = fea_ref / jnp.linalg.norm(fea_ref, axis=1, keepdims=True)
    fn_bf = fn_ref.astype(jnp.bfloat16).astype(jnp.float32)
    w_bf = (params["w_bin"].astype(jnp.float32) * S).astype(jnp.bfloat16).astype(jnp.float32)
    logit_ref = fn_bf @ w_bf.T + params["b_bin"] * S

    np.testing.assert_allclose(np.asarray(fea), np.asarray(fea_ref),
                               rtol=2e-2, atol=2e-2)
    np.testing.assert_allclose(np.asarray(logit_binary), np.asarray(logit_ref),
                               rtol=2e-2, atol=2e-1)
    print("KERNEL_OK")
</pallas_src>

<mosaic_0001>
module attributes {stable_mosaic.version = 11 : i64} {
  func.func @_pool_bn_norm_kernel(%arg0: i32, %arg1: memref<1x32x256xbf16, #tpu.memory_space<vmem>>, %arg2: memref<1x32xf32, #tpu.memory_space<vmem>>, %arg3: memref<1x32xf32, #tpu.memory_space<vmem>>, %arg4: memref<1x1x32xf32, #tpu.memory_space<vmem>>, %arg5: memref<1x1x32xbf16, #tpu.memory_space<vmem>>) attributes {dimension_semantics = [#tpu.dimension_semantics<parallel>], iteration_bounds = array<i64: 2>, scalar_prefetch = 0 : i64, scratch_operands = 0 : i64, tpu.core_type = #tpu.core_type<tc>, window_params = [{transform_indices = @transform_0, window_bounds = array<i64: 1, 32, 256>}, {pipeline_mode = #tpu.pipeline_mode<synchronous>, transform_indices = @transform_1, window_bounds = array<i64: 1, 32>}, {pipeline_mode = #tpu.pipeline_mode<synchronous>, transform_indices = @transform_2, window_bounds = array<i64: 1, 32>}, {transform_indices = @transform_3, window_bounds = array<i64: 1, 1, 32>}, {transform_indices = @transform_4, window_bounds = array<i64: 1, 1, 32>}]} {
    %c0 = arith.constant 0 : index
    %c0_0 = arith.constant 0 : index
    %c0_1 = arith.constant 0 : index
    %0 = vector.load %arg1[%c0, %c0_0, %c0_1] : memref<1x32x256xbf16, #tpu.memory_space<vmem>>, vector<1x32x256xbf16>
    %1 = vector.shape_cast %0 : vector<1x32x256xbf16> to vector<32x256xbf16>
    %2 = arith.extf %1 : vector<32x256xbf16> to vector<32x256xf32>
    %cst = arith.constant 9.99999997E-7 : f32
    %3 = vector.broadcast %cst : f32 to vector<32x256xf32>
    %4 = arith.maximumf %2, %3 : vector<32x256xf32>
    %5 = arith.mulf %4, %4 : vector<32x256xf32>
    %6 = arith.mulf %5, %4 : vector<32x256xf32>
    %cst_2 = arith.constant 3.906250e-03 : f32
    %7 = vector.broadcast %cst_2 : f32 to vector<1x256xf32>
    %cst_3 = arith.constant dense<0.000000e+00> : vector<1x32xf32>
    %8 = tpu.matmul %7, %6, %cst_3 {dimension_numbers = #tpu.dot_dimension_numbers<[1], [1], [0], [0], [0, 0, 1, 0], [], []>} : vector<1x256xf32>, vector<32x256xf32>, vector<1x32xf32> -> vector<1x32xf32>
    %9 = math.log %8 : vector<1x32xf32>
    %cst_4 = arith.constant 0.333333343 : f32
    %10 = vector.broadcast %cst_4 : f32 to vector<1x32xf32>
    %11 = arith.mulf %9, %10 : vector<1x32xf32>
    %12 = math.exp %11 : vector<1x32xf32>
    %c0_5 = arith.constant 0 : index
    %c0_6 = arith.constant 0 : index
    %13 = vector.load %arg2[%c0_5, %c0_6] : memref<1x32xf32, #tpu.memory_space<vmem>>, vector<1x32xf32>
    %14 = arith.mulf %12, %13 : vector<1x32xf32>
    %c0_7 = arith.constant 0 : index
    %c0_8 = arith.constant 0 : index
    %15 = vector.load %arg3[%c0_7, %c0_8] : memref<1x32xf32, #tpu.memory_space<vmem>>, vector<1x32xf32>
    %16 = arith.addf %14, %15 : vector<1x32xf32>
    %c0_9 = arith.constant 0 : index
    %c0_10 = arith.constant 0 : index
    %c0_11 = arith.constant 0 : index
    %17 = vector.load %arg4[%c0_9, %c0_10, %c0_11] : memref<1x1x32xf32, #tpu.memory_space<vmem>>, vector<1x1x32xf32>
    %18 = vector.shape_cast %17 : vector<1x1x32xf32> to vector<1x32xf32>
    %19 = vector.shape_cast %16 : vector<1x32xf32> to vector<1x1x32xf32>
    tpu.vector_store %arg4[%c0_9, %c0_10, %c0_11], %19 {strides = array<i32>} : memref<1x1x32xf32, #tpu.memory_space<vmem>>, vector<1x1x32xf32>,
    %20 = arith.mulf %16, %16 : vector<1x32xf32>
    %cst_12 = arith.constant dense<0.000000e+00> : vector<1xf32>
    %21 = vector.multi_reduction <add>, %20, %cst_12 [1] : vector<1x32xf32> to vector<1xf32>
    %22 = vector.shape_cast %21 : vector<1xf32> to vector<1x1xf32>
    %cst_13 = arith.constant 9.99999996E-13 : f32
    %23 = vector.broadcast %cst_13 : f32 to vector<1x1xf32>
    %24 = arith.addf %22, %23 : vector<1x1xf32>
    %25 = math.rsqrt %24 : vector<1x1xf32>
    %26 = vector.broadcast %25 : vector<1x1xf32> to vector<1x32xf32>
    %27 = arith.mulf %16, %26 : vector<1x32xf32>
    %28 = arith.truncf %27 : vector<1x32xf32> to vector<1x32xbf16>
    %c0_14 = arith.constant 0 : index
    %c0_15 = arith.constant 0 : index
    %c0_16 = arith.constant 0 : index
    %29 = vector.load %arg5[%c0_14, %c0_15, %c0_16] : memref<1x1x32xbf16, #tpu.memory_space<vmem>>, vector<1x1x32xbf16>
    %30 = vector.shape_cast %29 : vector<1x1x32xbf16> to vector<1x32xbf16>
    %31 = vector.shape_cast %28 : vector<1x32xbf16> to vector<1x1x32xbf16>
    tpu.vector_store %arg5[%c0_14, %c0_15, %c0_16], %31 {strides = array<i32>} : memref<1x1x32xbf16, #tpu.memory_space<vmem>>, vector<1x1x32xbf16>,
    return
  }
  func.func @transform_0(%arg0: i32) -> (i32, i32, i32) {
    %c0_i32 = arith.constant 0 : i32
    %c0_i32_0 = arith.constant 0 : i32
    %c0_i32_1 = arith.constant 0 : i32
    return %arg0, %c0_i32, %c0_i32_0 : i32, i32, i32
  }
  func.func @transform_1(%arg0: i32) -> (i32, i32) {
    %c0_i32 = arith.constant 0 : i32
    %c0_i32_0 = arith.constant 0 : i32
    %c0_i32_1 = arith.constant 0 : i32
    return %c0_i32, %c0_i32_0 : i32, i32
  }
  func.func @transform_2(%arg0: i32) -> (i32, i32) {
    %c0_i32 = arith.constant 0 : i32
    %c0_i32_0 = arith.constant 0 : i32
    %c0_i32_1 = arith.constant 0 : i32
    return %c0_i32, %c0_i32_0 : i32, i32
  }
  func.func @transform_3(%arg0: i32) -> (i32, i32, i32) {
    %c0_i32 = arith.constant 0 : i32
    %c0_i32_0 = arith.constant 0 : i32
    %c0_i32_1 = arith.constant 0 : i32
    return %arg0, %c0_i32, %c0_i32_0 : i32, i32, i32
  }
  func.func @transform_4(%arg0: i32) -> (i32, i32, i32) {
    %c0_i32 = arith.constant 0 : i32
    %c0_i32_0 = arith.constant 0 : i32
    %c0_i32_1 = arith.constant 0 : i32
    return %arg0, %c0_i32, %c0_i32_0 : i32, i32, i32
  }
}

</mosaic_0001>

<bundles_post_ra>
// kernel: tpu_custom_call.1
= control target key start
LH: loop header
LB: loop body
LE: loop exit
PB: predicated region body
PF: predicated region fallthrough
CT: control target
= control target key end

     0   :  { %10 = vsyncpa [#allocation3], 0  ;;  %s805_s0 = inlined_call_operand.hbm [shape: bf16[2,32,256], index: 0, kind: input, shape index: {}]   ;;  %s806_s1 = inlined_call_operand.vmem [shape: f32[1,32], index: 1, kind: input, shape index: {}]   ;;  %s807_s2 = inlined_call_operand.vmem [shape: f32[1,32], index: 2, kind: input, shape index: {}]   ;;  %s808_s3 = inlined_call_operand.hbm [shape: f32[2,1,32], index: 3, kind: output, shape index: {0}]   ;;  %s809_s4 = inlined_call_operand.vmem [shape: bf16[2,1,32], index: 4, kind: output, shape index: {1}]  }
   0x1   :  { %12 = vsyncpa [#allocation3 + $0x1], 0 }
   0x2   :  { %13 = vsyncpa [#allocation4], 0 }
   0x3   :  { %15 = vsyncpa [#allocation4 + $0x1], 0  ;;  %s650_s15 = smov 0   ;;  %s652_s16 = smov 0  }
   0x4   :  { %s654_s17 = smov 0   ;;  %s656_s18 = smov 0  }
   0x5 LB: > { %s671_s19 = sadd.s32 4294967295, %s618_s18   ;;  %s459_s20 = sadd.s32 4294967294, %s618_s18   ;;  %s618_s18 = sphi %s656_s18, %s824_s18   ;;  %s614_s17 = sphi %s654_s17, %s823_s17   ;;  %s610_s16 = sphi %s652_s16, %s822_s16   ;;  %s606_s15 = sphi %s650_s15, %s821_s15  }
   0x6   : > { %s675_s21 = sadd.s32 1, %s618_s18   ;;  %s28_s22 = sadd.s32 1, %s614_s17 }
   0x7   : > { %s25_s23 = ssub.s32 %s618_s18, %s675_s21  ;;  %p35_p0 = scmp.ne.s32.totalorder %s614_s17, %s610_s16 }
   0x8   : > { %p26_p1 = scmp.eq.s32.totalorder %s25_s23, 0  ;;  %p36_p2 = scmp.eq.s32.totalorder %s618_s18, 0 }
   0x9   : > { %p41_p3 = scmp.ne.s32.totalorder %s610_s16, %s606_s15  ;;  %p42_p4 = scmp.eq.s32.totalorder %s671_s19, 0 }
   0xa   : > { %s687_s24 = scalar_select %p26_p1, %s614_s17, %s28_s22  }
   0xb   : > { %p689_p5 = por %p36_p2, %p35_p0  ;;  %p693_p6 = por %p42_p4, %p41_p3 }
   0xc   : > { %p107_p7 = scmp.eq.s32.totalorder %s671_s19, 1  ;;  %p113_p8 = scmp.eq.s32.totalorder %s459_s20, 1 }
   0xd   : > { %s813_s26 = scalar_select %p693_p6, 1, 0 }
   0xe   : > { %p483_p10 = scmp.lt.s32.totalorder %s618_s18, 2  ;;  %p700_p11 = por %p107_p7, %p35_p0 }
   0xf   : > { %p704_p12 = por %p113_p8, %p41_p3  ;;  %s165_s29 = sand.u32 1, %s614_s17  }
  0x10   : > { %s814_s27 = scalar_select %p700_p11, 1, 0 }
  0x11   : > { %s815_s28 = scalar_select %p704_p12, 1, 0 }
  0x12   : > { %s470_s30 = sshll.u32 %s618_s18, 9  ;;  %s462_s5 = sshll.u32 %s165_s29, 5 }
  0x13   : > { %s713_s8 = scalar_lea.hbm %s805_s0, %s470_s30  ;;  %s169_s9 = scalar_lea.vmem [#allocation2], %s462_s5 }
  0x14   : > { %s176_s10 = sshll.u32 %s169_s9, 4  ;;  %p717_p13 = pnand %p483_p10, %p689_p5  ;;  %s721_s10 = int_to_ptr.vmem [resolvable:$true] %s176_s10 }
  0x15   : > { %s723_s12 = scalar_lea.sflag [#allocation3], %s165_s29  ;;  %s526_s13 = scalar_lea.hbm %s713_s8, 512 }
  0x16   : > { %p527_p0 = scmp.ne.s32.totalorder %s713_s8, %s526_s13  ;;  %p528_p1 = pneg %p717_p13 }
  0x17   : > { %s531_s22 = scalar_lea.hbm %s805_s0, 1024  ;;  %p532_p4 = scmp.lt.s32.totalorder %s713_s8, %s805_s0 }
  0x18   : > { %p529_p2 = pnand %p528_p1, %p527_p0  ;;  %p533_p5 = scmp.lt.s32.totalorder %s531_s22, %s526_s13 }
  0x1a   : > { %p530_p3 = pneg %p529_p2  ;;  %p534_p7 = por %p533_p5, %p532_p4 }
  0x1c   : > { %p535_p8 = pnand %p534_p7, %p530_p3 }
  0x1e   : > { %538 = shalt.err (!%p535_p8)
}
  0x1f   : > { %s539_s29 = scalar_lea.vmem %s721_s10, 512  ;;  %s620_s30 = smov [#allocation2]  }
  0x20   : > { %p540_p10 = scmp.ne.s32.totalorder %s721_s10, %s539_s29  ;;  %s544_s5 = sshll.u32 %s620_s30, 4  ;;  %s545_s5 = int_to_ptr.vmem [resolvable:$false] %s544_s5 }
  0x21   : > { %s546_s6 = scalar_lea.vmem %s545_s5, 1024  ;;  %p547_p2 = scmp.lt.s32.totalorder %s721_s10, %s545_s5 }
  0x22   : > { %p542_p9 = pnand %p540_p10, %p528_p1  ;;  %p548_p12 = scmp.lt.s32.totalorder %s546_s6, %s539_s29 }
  0x24   : > { %p543_p0 = pneg %p542_p9  ;;  %p549_p11 = por %p548_p12, %p547_p2 }
  0x26   : > { %p550_p6 = pnand %p549_p11, %p543_p0 }
  0x28   : > { %553 = shalt.err (!%p550_p6)
}
  0x29   : > { %s621_s7 = smov 128   ;;  %s622_s9 = smov 8  }
  0x2a   : > { %478 = dma.hbm_to_vmem [thread:$0]  (!%p717_p13), %s713_s8, 512, %s721_s10, %s723_s12, %s621_s7, %s621_s7, %s622_s9  }
  0x2b   : > { %p465_p9 = scmp.ge.s32.totalorder %s618_s18, 1  ;;  %p184_p1 = scmp.lt.s32.totalorder %s618_s18, 3 }
  0x2d   : > { %p185_p3 = pnand %p465_p9, %p184_p1 }
  0x2e   : > { %s747_s13 = sand.u32 (!%p185_p3), 1, %s610_s16   ;;  %p817_p6 = scmp.ne.s32.totalorder (!%p185_p3), %s813_s26, 0 }
  0x2f   : > { %188 = sbr.rel (%p185_p3) target bundleno = 472 (0x1d8), region = 32  ;;  %s466_s14 = sshll.u32 (!%p185_p3), %s747_s13, 5 }
  0x30   : > { %s191_s20 = scalar_lea.sflag (!%p185_p3), [#allocation3], %s747_s13  ;;  %s194_s22 = scalar_lea.vmem (!%p185_p3), [#allocation2], %s466_s14 }
  0x34   : > { %597 = dma.done.wait (%p817_p6), %s191_s20, 512  }
  0x35   : > { %599 = vsyncadd (%p817_p6), %s191_s20, 4294966784  ;;  %v623_v0 = vmov 0.00390625   ;;  %v227_v1 = vld [vmem:[%s194_s22 + $0x18] sm:$0xff]  ;;  %v226_v2 = vld [vmem:[%s194_s22 + $0x10] sm:$0xff]  ;;  %vm339_vm0 = vcmask 253952   ;;  %s215_s12 = scalar_lea.vmem [#allocation5], %s747_s13 }
  0x36   : > { %324 = vmatprep.mubr.f32.mxu0 %v623_v0  ;;  %v225_v3 = vld [vmem:[%s194_s22 + $0x8] sm:$0xff]  ;;  %v235_v4 = vunpack.c.h.bf16 %v227_v1  ;;  %v234_v5 = vunpack.c.l.bf16 %v227_v1  ;;  %v233_v6 = vunpack.c.h.bf16 %v226_v2  ;;  %v232_v7 = vunpack.c.l.bf16 %v226_v2  ;;  %v224_v8 = vld [vmem:[%s194_s22] sm:$0xff]  ;;  %s467_s23 = sshll.u32 %s671_s19, 4  ;;  %s371_s25 = sshll.u32 %s215_s12, 4  ;;  %s372_s25 = int_to_ptr.vmem [resolvable:$true] %s371_s25 }
  0x37   : > { %v231_v9 = vunpack.c.h.bf16 %v225_v3  ;;  %v230_v10 = vunpack.c.l.bf16 %v225_v3  ;;  %v229_v11 = vunpack.c.h.bf16 %v224_v8  ;;  %v228_v23 = vunpack.c.l.bf16 %v224_v8  ;;  %v335_v43 = vld [vmem:[%s806_s1] sm:$0x1]  ;;  %s369_s5 = scalar_lea.hbm %s808_s3, %s467_s23  ;;  %s356_s6 = scalar_lea.sflag [#allocation4], %s747_s13 }
  0x38   : > { %v243_v12 = vmax.f32 %v235_v4, 1e-06  ;;  %v242_v13 = vmax.f32 %v234_v5, 1e-06  ;;  %v241_v14 = vmax.f32 %v233_v6, 1e-06 }
  0x39   : > { %v240_v15 = vmax.f32 %v232_v7, 1e-06  ;;  %v239_v16 = vmax.f32 %v231_v9, 1e-06  ;;  %v238_v21 = vmax.f32 %v230_v10, 1e-06 }
  0x3a   : > { %v251_v17 = vmul.f32 %v243_v12, %v243_v12  ;;  %v250_v18 = vmul.f32 %v242_v13, %v242_v13  ;;  %v249_v19 = vmul.f32 %v241_v14, %v241_v14  ;;  %v237_v22 = vmax.f32 %v229_v11, 1e-06  ;;  %v337_v45 = vld [vmem:[%s807_s2] sm:$0x1]  ;;  %s554_s7 = scalar_lea.vmem %s372_s25, 16  ;;  %p818_p12 = scmp.ne.s32.totalorder %s814_s27, 0 }
  0x3b   : > { %v248_v20 = vmul.f32 %v240_v15, %v240_v15  ;;  %v247_v27 = vmul.f32 %v239_v16, %v239_v16  ;;  %v246_v29 = vmul.f32 %v238_v21, %v238_v21  ;;  %v236_v30 = vmax.f32 %v228_v23, 1e-06  ;;  %p555_p11 = scmp.ne.s32.totalorder %s372_s25, %s554_s7  ;;  %s624_s9 = smov [#allocation5]  }
  0x3c   : > { %v259_v24 = vmul.f32 %v251_v17, %v243_v12  ;;  %v258_v25 = vmul.f32 %v250_v18, %v242_v13  ;;  %v257_v26 = vmul.f32 %v249_v19, %v241_v14  ;;  %v245_v32 = vmul.f32 %v237_v22, %v237_v22  ;;  %s558_s14 = sshll.u32 %s624_s9, 4  ;;  %s559_s14 = int_to_ptr.vmem [resolvable:$false] %s558_s14 }
  0x3d   : > { %v256_v28 = vmul.f32 %v248_v20, %v240_v15  ;;  %v255_v31 = vmul.f32 %v247_v27, %v239_v16  ;;  %v254_v33 = vmul.f32 %v246_v29, %v238_v21  ;;  %v244_v34 = vmul.f32 %v236_v30, %v236_v30  ;;  %p556_p13 = pnand %p555_p11, %p818_p12  ;;  %s560_s20 = scalar_lea.vmem %s559_s14, 32 }
  0x3e   : > { %284 = vmatprep.subr.mxu0 %v259_v24  ;;  %v253_v35 = vmul.f32 %v245_v32, %v237_v22  ;;  %p561_p5 = scmp.lt.s32.totalorder %s372_s25, %s559_s14  ;;  %p562_p7 = scmp.lt.s32.totalorder %s560_s20, %s554_s7 }
  0x3f   : > { %285 = vmatpush1.xpose.msra.mxu0 %v258_v25  ;;  %v252_v36 = vmul.f32 %v244_v34, %v236_v30  ;;  %p557_p4 = pneg %p556_p13 }
  0x40   : > { %286 = vmatprep.subr.mxu0 %v257_v26  ;;  %p563_p8 = por %p562_p7, %p561_p5 }
  0x42   : > { %p564_p10 = pnand %p563_p8, %p557_p4 }
  0x43   : > { %287 = vmatpush1.xpose.msra.mxu0 %v256_v28 }
  0x44   : > { %288 = vmatprep.subr.mxu0 %v255_v31 }
  0x47   : > { %289 = vmatpush1.xpose.msra.mxu0 %v254_v33 }
  0x48   : > { %290 = vmatprep.subr.mxu0 %v253_v35 }
  0x4b   : > { %291 = vmatpush1.xpose.msra.mxu0 %v252_v36 }
  0x4e   : > { %325 = vmatmul.mubr.f32.vlgmr.msra.gmra.mxu0 %v623_v0 }
 0x10e   : > { %v326_v37 = vpop.f32.mrf.mxu0 }
 0x10f   : > { %520 = vlog2.f32 %v326_v37 }
 0x110   : > { %v328_v38 = vpop.f32.mrf.mxu0 }
 0x11c   : > { %v521_v39 = vpop.eup %520 }
 0x11d   : > { %v331_v40 = vmul.f32 0.6931472, %v521_v39 }
 0x11f   : > { %v332_v41 = vmul.f32 0.33333334, %v331_v40 }
 0x121   : > { %v333_v42 = vmul.f32 1.442695, %v332_v41 }
 0x123   : > { %522 = vpow2.f32 %v333_v42 }
 0x130   : > { %v523_v44 = vpop.eup %522 }
 0x131   : > { %v336_v46 = vmul.f32 %v523_v44, %v335_v43 }
 0x133   : > { %v338_v47 = vadd.f32 %v337_v45, %v336_v46 }
 0x135   : > { %v341_v48 = vmul.f32 %v338_v47, %v338_v47  ;;  %340 = vst.msk [vmem:[%s215_s12] sm:$0x1] %vm339_vm0, %v338_v47 }
 0x137   : > { %v342_v49 = vsel %vm339_vm0, %v341_v48, 0.0 }
 0x138   : > { %343 = vadd.xlane.f32.xlu0 %v342_v49 }
 0x139   : > { %567 = shalt.err (!%p564_p10)
}
 0x13a   : > { %s568_s22 = scalar_lea.hbm %s369_s5, 16  ;;  %s572_s8 = scalar_lea.hbm %s808_s3, 32 }
 0x13b   : > { %p569_p0 = scmp.ne.s32.totalorder %s369_s5, %s568_s22  ;;  %p573_p1 = scmp.lt.s32.totalorder %s369_s5, %s808_s3 }
 0x13c   : > { %p574_p3 = scmp.lt.s32.totalorder %s572_s8, %s568_s22 }
 0x13d   : > { %p570_p2 = pnand %p569_p0, %p818_p12 }
 0x13e   : > { %p575_p6 = por %p574_p3, %p573_p1 }
 0x13f   : > { %p571_p9 = pneg %p570_p2 }
 0x141   : > { %p576_p11 = pnand %p575_p6, %p571_p9 }
 0x143   : > { %579 = shalt.err (!%p576_p11)
}
 0x144   : > { %473 = dma.vmem_to_hbm [thread:$0]  (%p818_p12), %s372_s25, 16, %s369_s5, %s356_s6   ;;  %vm350_vm1 = vsmask.f32 256 }
 0x145   : > { %p221_p13 = scmp.lt.s32.totalorder %s671_s19, 1  ;;  %vm351_vm2 = vmand %vm339_vm0, %vm350_vm1 }
 0x147   : > { %s826_s19 = smov (!%p221_p13, %s671_s19), 1 }
 0x148   : > { %s223_s29 = scalar_lea.vmem %s809_s4, %s826_s19 }
 0x149   : > { %v352_v54 = vld [vmem:[%s223_s29] sm:$0x1] }
 0x1c1   : > { %v344_v50 = vpop.xlane.xlu0 %343 }
 0x1c2   : > { %v345_v51 = vadd.f32 1e-12, %v344_v50 }
 0x1c4   : > { %524 = vrsqrt.f32 %v345_v51 }
 0x1d1   : > { %v525_v52 = vpop.eup %524 }
 0x1d2   : > { %v347_v53 = vmul.f32 %v525_v52, %v338_v47 }
 0x1d4   : > { %v348_v55 = vpack.c.bf16 %v347_v53, %v347_v53 }
 0x1d6   : > { %v353_v56 = vsel %vm351_vm2, %v348_v55, %v352_v54 }
 0x1d7   : > { %354 = vst [vmem:[%s223_s29] sm:$0x1] %v353_v56 }
 0x1d8 PF: > { %s386_s27 = sand.u32 1, %s606_s15   ;;  %p819_p12 = scmp.ne.s32.totalorder %s815_s28, 0 }
 0x1d9   : > { %p820_p4 = scmp.ge.s32.totalorder %s618_s18, 2  ;;  %s387_s25 = scalar_lea.sflag [#allocation4], %s386_s27 }
 0x1db   : > { %p480_p5 = pnand %p820_p4, %p819_p12 }
 0x1dd   : > { %p481_p7 = pneg %p480_p5 }
 0x1df   : > { %601 = dma.done.wait (%p481_p7), %s387_s25, 16  }
 0x1e0   : > { %603 = vsyncadd (%p481_p7), %s387_s25, 4294967280  ;;  %p18_p8 = scmp.ge.s32.totalorder %s675_s21, 4   ;;  %s821_s15 = smov %s610_s16 }
 0x1e1   : > { %s822_s16 = smov %s614_s17  ;;  %s823_s17 = smov %s687_s24 }
 0x1e2   : > { %s824_s18 = smov %s675_s21  ;;  %20 = sbr.rel (!%p18_p8) target bundleno = 5 (0x5), region = 89 }
 0x1e7   :  { %397 = vsyncpa [#allocation3], 1 }
 0x1e8   :  { %399 = vsyncpa [#allocation3 + $0x1], 1 }
 0x1e9   :  { %400 = vsyncpa [#allocation4], 1 }
 0x1ea   :  { %402 = vsyncpa [#allocation4 + $0x1], 1 }

</bundles_post_ra>
